<compile_context>
chip_gen: v7x
topology: tpu7x:2x2x1
jax: 0.10.0
libtpu: 0.0.40
codegen_flags: <defaults>
</compile_context>

<pallas_src>
import jax
import jax.numpy as jnp
from jax import lax
from jax.experimental import pallas as pl
from jax.experimental.pallas import tpu as pltpu

_VMEM_LIMIT = 48 * 1024 * 1024      # explicit scoped-VMEM limit (safe on v5e/v6e/v7x)
_BLOCK_BUDGET = 8 * 1024 * 1024     # per-input, double-buffered block budget


def _node_tile(n, f, itemsize, budget=_BLOCK_BUDGET):
    """Largest lane-friendly node tile whose double-buffered block fits the budget."""
    for t in (16384, 8192, 4096, 2048, 1024, 512, 256, 128):
        if n % t == 0 and 2 * t * f * itemsize <= budget:
            return t, 0
    if 2 * n * f * itemsize <= budget:
        return n, 0                      # small / oddly-sized graph: one block
    # Guard: large graph whose node count divides no listed tile -> pad to a
    # pipelineable tile instead of taking the whole node axis as one block.
    t = 1024
    return t, (-n) % t


# ---------------------------------------------------------------------------
# Kernel 1: tiled projection + sigmoid -> lane-dense scores (bs, N)
# ---------------------------------------------------------------------------
def score_kernel(h_ref, w_ref, b_ref, s_ref):
    # h_ref: (BT, TN, F) VMEM   w_ref: (1, F) VMEM   b_ref: (1,) f32 SMEM
    # s_ref: (BT, TN) VMEM  -- node axis on lanes -> unmasked lane-dense stores
    logits = jnp.sum(h_ref[...] * w_ref[...], axis=-1) + b_ref[0]   # VPU + XLU reduce
    s_ref[...] = jax.nn.sigmoid(logits).astype(s_ref.dtype)


def graph_pool_scores(h, w, b):
    bs, n, f = h.shape
    itemsize = h.dtype.itemsize
    tn, pad = _node_tile(n, f, itemsize)
    if pad:
        # Padded node rows are sliced off below before top_k ever sees them.
        h = jnp.pad(h, ((0, 0), (0, pad), (0, 0)))
    n_p = n + pad

    # Batch-row blocking: grow each grid step toward ~2-4 MiB of input traffic so
    # the per-step pipeline overhead (~0.35 us) is amortized against HBM time.
    bt = 1
    for cand in range(bs, 0, -1):
        if bs % cand == 0 and cand * tn * f * itemsize <= 4 * 1024 * 1024:
            bt = cand
            break

    scores = pl.pallas_call(
        score_kernel,
        out_shape=jax.ShapeDtypeStruct((bs, n_p), jnp.float32),
        grid_spec=pltpu.PrefetchScalarGridSpec(
            num_scalar_prefetch=0,
            grid=(bs // bt, n_p // tn),
            in_specs=[
                pl.BlockSpec((bt, tn, f), lambda bi, ti: (bi, ti, 0)),
                pl.BlockSpec((1, f), lambda bi, ti: (0, 0)),
                pl.BlockSpec(memory_space=pltpu.MemorySpace.SMEM),   # bias (1,)
            ],
            out_specs=pl.BlockSpec((bt, tn), lambda bi, ti: (bi, ti)),
        ),
        compiler_params=pltpu.CompilerParams(
            dimension_semantics=("parallel", "parallel"),
            vmem_limit_bytes=_VMEM_LIMIT),
    )(h, w, b)
    return scores[:, :n] if pad else scores


# ---------------------------------------------------------------------------
# Kernel 2: fused top-k row gather + weighting, one streaming slab per batch row
# ---------------------------------------------------------------------------
def gather_weight_kernel(idx_ref, ts_ref, h_ref, out_ref):
    # idx_ref: (bs*n_keep,) i32 SMEM (scalar prefetch, flat 1-D)
    # ts_ref : (bs*n_keep,) f32 SMEM (flat 1-D) -- top-k sigmoid scores
    # h_ref  : (1, N, F) VMEM  -- whole per-batch slab, one streaming DMA in
    # out_ref: (1, n_keep, F) VMEM -- one slab write-back DMA out
    b = pl.program_id(0)
    n_keep = out_ref.shape[1]
    base = b * n_keep

    def body(g, carry):
        row = idx_ref[base + g]
        s = ts_ref[base + g]
        out_ref[0, pl.ds(g, 1), :] = (
            h_ref[0, pl.ds(row, 1), :] * s).astype(out_ref.dtype)
        return carry

    lax.fori_loop(0, n_keep, body, 0, unroll=(n_keep <= 32))


def gather_weight_topk(h, top_idx, top_scores):
    bs, n, f = h.shape
    n_keep = top_idx.shape[1]
    idx_flat = top_idx.reshape(-1).astype(jnp.int32)      # 1-D SMEM: benign padding
    ts_flat = top_scores.reshape(-1).astype(jnp.float32)  # 1-D SMEM: benign padding
    # TODO(synk): if 2*N*F*itemsize (double-buffered slab) exceeds VMEM, tile the
    # node axis and gather per tile (or switch to multi-row manual-DMA gathers).
    return pl.pallas_call(
        gather_weight_kernel,
        out_shape=jax.ShapeDtypeStruct((bs, n_keep, f), h.dtype),
        grid_spec=pltpu.PrefetchScalarGridSpec(
            num_scalar_prefetch=1,                               # top_idx -> SMEM
            grid=(bs,),
            in_specs=[
                pl.BlockSpec(memory_space=pltpu.MemorySpace.SMEM),    # scores (1-D)
                pl.BlockSpec((1, n, f), lambda bi, idx: (bi, 0, 0)),  # full h slab
            ],
            out_specs=pl.BlockSpec((1, n_keep, f), lambda bi, idx: (bi, 0, 0)),
        ),
        compiler_params=pltpu.CompilerParams(
            dimension_semantics=("parallel",),
            vmem_limit_bytes=_VMEM_LIMIT),
    )(idx_flat, ts_flat, h)


# ---------------------------------------------------------------------------
# Full forward (matches GraphPool.forward with Identity dropout)
# ---------------------------------------------------------------------------
def graph_pool_forward(h, w, b, k):
    bs, n, f = h.shape
    n_keep = max(1, int(n * k))
    scores = graph_pool_scores(h, w, b)                 # (bs, N) f32, lane-dense
    # TODO(synk): the top-k sort itself has no clean Pallas TPU equivalent; JAX glue.
    top_vals, top_idx = lax.top_k(scores, n_keep)       # sorted descending (as torch)
    return gather_weight_topk(h, top_idx.astype(jnp.int32), top_vals)


def reference_forward(h, w, b, k):
    n = h.shape[1]
    n_keep = max(1, int(n * k))
    scores = jax.nn.sigmoid(jnp.einsum("bnf,f->bn", h, w[0]) + b[0])   # (bs, N)
    _, top_idx = lax.top_k(scores, n_keep)
    hw = h * scores[..., None]
    return jnp.take_along_axis(hw, top_idx[..., None], axis=1)


if __name__ == "__main__":
    bs, n_nodes, in_dim = 2, 16, 32
    k_ratio, p_drop = 0.5, 0.0                          # p=0 -> Identity dropout

    key = jax.random.PRNGKey(0)
    kh, kw, kb = jax.random.split(key, 3)
    h = jax.random.normal(kh, (bs, n_nodes, in_dim), dtype=jnp.float32)
    # nn.Linear(in_dim, 1): weight (1, in_dim), bias (1,).
    w = jax.random.normal(kw, (1, in_dim), dtype=jnp.float32) / jnp.sqrt(in_dim)
    b = jax.random.normal(kb, (1,), dtype=jnp.float32) * 0.1

    fwd = jax.jit(graph_pool_forward, static_argnums=3)
    out = jax.block_until_ready(fwd(h, w, b, k_ratio))

    ref = reference_forward(h, w, b, k_ratio)
    n_keep = max(1, int(n_nodes * k_ratio))
    assert out.shape == (bs, n_keep, in_dim)
    # NOTE: with near-tied scores the Pallas vs reference score paths could flip
    # top-k order; at these deterministic shapes/values selection is unambiguous.
    assert jnp.allclose(out, ref, atol=1e-5, rtol=1e-5), "mismatch vs reference"

    print("KERNEL_OK")
</pallas_src>

<mosaic_0001>
module attributes {stable_mosaic.version = 11 : i64} {
  func.func @score_kernel(%arg0: i32, %arg1: i32, %arg2: memref<2x16x32xf32, #tpu.memory_space<vmem>>, %arg3: memref<1x32xf32, #tpu.memory_space<vmem>>, %arg4: memref<1xf32, #tpu.memory_space<smem>>, %arg5: memref<2x16xf32, #tpu.memory_space<vmem>>) attributes {dimension_semantics = [#tpu.dimension_semantics<parallel>, #tpu.dimension_semantics<parallel>], iteration_bounds = array<i64: 1, 1>, scalar_prefetch = 0 : i64, scratch_operands = 0 : i64, tpu.core_type = #tpu.core_type<tc>, window_params = [{transform_indices = @transform_0, window_bounds = array<i64: 2, 16, 32>}, {pipeline_mode = #tpu.pipeline_mode<synchronous>, transform_indices = @transform_1, window_bounds = array<i64: 1, 32>}, {transform_indices = @transform_2, window_bounds = array<i64: 1>}, {transform_indices = @transform_3, window_bounds = array<i64: 2, 16>}]} {
    %c0 = arith.constant 0 : index
    %c0_0 = arith.constant 0 : index
    %c0_1 = arith.constant 0 : index
    %0 = vector.load %arg2[%c0, %c0_0, %c0_1] : memref<2x16x32xf32, #tpu.memory_space<vmem>>, vector<2x16x32xf32>
    %c0_2 = arith.constant 0 : index
    %c0_3 = arith.constant 0 : index
    %1 = vector.load %arg3[%c0_2, %c0_3] : memref<1x32xf32, #tpu.memory_space<vmem>>, vector<1x32xf32>
    %2 = vector.shape_cast %1 : vector<1x32xf32> to vector<1x1x32xf32>
    %3 = vector.broadcast %2 : vector<1x1x32xf32> to vector<2x16x32xf32>
    %4 = arith.mulf %0, %3 : vector<2x16x32xf32>
    %cst = arith.constant dense<0.000000e+00> : vector<2x16xf32>
    %5 = vector.multi_reduction <add>, %4, %cst [2] : vector<2x16x32xf32> to vector<2x16xf32>
    %c0_4 = arith.constant 0 : index
    %6 = memref.load %arg4[%c0_4] : memref<1xf32, #tpu.memory_space<smem>>
    %7 = vector.broadcast %6 : f32 to vector<2x16xf32>
    %8 = arith.addf %5, %7 : vector<2x16xf32>
    %9 = arith.negf %8 : vector<2x16xf32>
    %10 = math.exp %9 : vector<2x16xf32>
    %cst_5 = arith.constant 1.000000e+00 : f32
    %11 = vector.broadcast %cst_5 : f32 to vector<2x16xf32>
    %12 = arith.addf %11, %10 : vector<2x16xf32>
    %13 = arith.divf %11, %12 : vector<2x16xf32>
    %c0_6 = arith.constant 0 : index
    %c0_7 = arith.constant 0 : index
    %14 = vector.load %arg5[%c0_6, %c0_7] : memref<2x16xf32, #tpu.memory_space<vmem>>, vector<2x16xf32>
    tpu.vector_store %arg5[%c0_6, %c0_7], %13 {strides = array<i32>} : memref<2x16xf32, #tpu.memory_space<vmem>>, vector<2x16xf32>,
    return
  }
  func.func @transform_0(%arg0: i32, %arg1: i32) -> (i32, i32, i32) {
    %c0_i32 = arith.constant 0 : i32
    %c0_i32_0 = arith.constant 0 : i32
    return %arg0, %arg1, %c0_i32 : i32, i32, i32
  }
  func.func @transform_1(%arg0: i32, %arg1: i32) -> (i32, i32) {
    %c0_i32 = arith.constant 0 : i32
    %c0_i32_0 = arith.constant 0 : i32
    %c0_i32_1 = arith.constant 0 : i32
    return %c0_i32, %c0_i32_0 : i32, i32
  }
  func.func @transform_2(%arg0: i32, %arg1: i32) -> i32 {
    %c0_i32 = arith.constant 0 : i32
    %c0_i32_0 = arith.constant 0 : i32
    return %c0_i32 : i32
  }
  func.func @transform_3(%arg0: i32, %arg1: i32) -> (i32, i32) {
    %c0_i32 = arith.constant 0 : i32
    return %arg0, %arg1 : i32, i32
  }
}

module attributes {stable_mosaic.version = 11 : i64} {
  func.func @gather_weight_kernel(%arg0: i32, %arg1: memref<16xi32, #tpu.memory_space<smem>>, %arg2: memref<16xf32, #tpu.memory_space<smem>>, %arg3: memref<1x16x32xf32, #tpu.memory_space<vmem>>, %arg4: memref<1x8x32xf32, #tpu.memory_space<vmem>>) attributes {dimension_semantics = [#tpu.dimension_semantics<parallel>], iteration_bounds = array<i64: 2>, scalar_prefetch = 1 : i64, scratch_operands = 0 : i64, tpu.core_type = #tpu.core_type<tc>, window_params = [{transform_indices = @transform_0, window_bounds = array<i64: 16>}, {transform_indices = @transform_1, window_bounds = array<i64: 1, 16, 32>}, {transform_indices = @transform_2, window_bounds = array<i64: 1, 8, 32>}]} {
    %c8_i32 = arith.constant 8 : i32
    %0 = arith.muli %arg0, %c8_i32 : i32
    %c0_i32 = arith.constant 0 : i32
    %1 = arith.addi %0, %c0_i32 : i32
    %2 = arith.index_cast %1 : i32 to index
    %3 = memref.load %arg1[%2] : memref<16xi32, #tpu.memory_space<smem>>
    %4 = arith.addi %0, %c0_i32 : i32
    %5 = arith.index_cast %4 : i32 to index
    %6 = memref.load %arg2[%5] : memref<16xf32, #tpu.memory_space<smem>>
    %c0 = arith.constant 0 : index
    %7 = arith.index_cast %3 : i32 to index
    %c0_0 = arith.constant 0 : index
    %8 = vector.load %arg3[%c0, %7, %c0_0] : memref<1x16x32xf32, #tpu.memory_space<vmem>>, vector<1x1x32xf32>
    %9 = vector.shape_cast %8 : vector<1x1x32xf32> to vector<1x32xf32>
    %10 = vector.broadcast %6 : f32 to vector<1x32xf32>
    %11 = arith.mulf %9, %10 : vector<1x32xf32>
    %c0_1 = arith.constant 0 : index
    %12 = arith.index_cast %c0_i32 : i32 to index
    %c0_2 = arith.constant 0 : index
    %13 = vector.load %arg4[%c0_1, %12, %c0_2] : memref<1x8x32xf32, #tpu.memory_space<vmem>>, vector<1x1x32xf32>
    %14 = vector.shape_cast %13 : vector<1x1x32xf32> to vector<1x32xf32>
    %15 = vector.shape_cast %11 : vector<1x32xf32> to vector<1x1x32xf32>
    tpu.vector_store %arg4[%c0_1, %12, %c0_2], %15 {strides = array<i32>} : memref<1x8x32xf32, #tpu.memory_space<vmem>>, vector<1x1x32xf32>,
    %c1_i32 = arith.constant 1 : i32
    %16 = arith.addi %0, %c1_i32 : i32
    %17 = arith.index_cast %16 : i32 to index
    %18 = memref.load %arg1[%17] : memref<16xi32, #tpu.memory_space<smem>>
    %19 = arith.addi %0, %c1_i32 : i32
    %20 = arith.index_cast %19 : i32 to index
    %21 = memref.load %arg2[%20] : memref<16xf32, #tpu.memory_space<smem>>
    %c0_3 = arith.constant 0 : index
    %22 = arith.index_cast %18 : i32 to index
    %c0_4 = arith.constant 0 : index
    %23 = vector.load %arg3[%c0_3, %22, %c0_4] : memref<1x16x32xf32, #tpu.memory_space<vmem>>, vector<1x1x32xf32>
    %24 = vector.shape_cast %23 : vector<1x1x32xf32> to vector<1x32xf32>
    %25 = vector.broadcast %21 : f32 to vector<1x32xf32>
    %26 = arith.mulf %24, %25 : vector<1x32xf32>
    %c0_5 = arith.constant 0 : index
    %27 = arith.index_cast %c1_i32 : i32 to index
    %c0_6 = arith.constant 0 : index
    %28 = vector.load %arg4[%c0_5, %27, %c0_6] : memref<1x8x32xf32, #tpu.memory_space<vmem>>, vector<1x1x32xf32>
    %29 = vector.shape_cast %28 : vector<1x1x32xf32> to vector<1x32xf32>
    %30 = vector.shape_cast %26 : vector<1x32xf32> to vector<1x1x32xf32>
    tpu.vector_store %arg4[%c0_5, %27, %c0_6], %30 {strides = array<i32>} : memref<1x8x32xf32, #tpu.memory_space<vmem>>, vector<1x1x32xf32>,
    %c2_i32 = arith.constant 2 : i32
    %31 = arith.addi %0, %c2_i32 : i32
    %32 = arith.index_cast %31 : i32 to index
    %33 = memref.load %arg1[%32] : memref<16xi32, #tpu.memory_space<smem>>
    %34 = arith.addi %0, %c2_i32 : i32
    %35 = arith.index_cast %34 : i32 to index
    %36 = memref.load %arg2[%35] : memref<16xf32, #tpu.memory_space<smem>>
    %c0_7 = arith.constant 0 : index
    %37 = arith.index_cast %33 : i32 to index
    %c0_8 = arith.constant 0 : index
    %38 = vector.load %arg3[%c0_7, %37, %c0_8] : memref<1x16x32xf32, #tpu.memory_space<vmem>>, vector<1x1x32xf32>
    %39 = vector.shape_cast %38 : vector<1x1x32xf32> to vector<1x32xf32>
    %40 = vector.broadcast %36 : f32 to vector<1x32xf32>
    %41 = arith.mulf %39, %40 : vector<1x32xf32>
    %c0_9 = arith.constant 0 : index
    %42 = arith.index_cast %c2_i32 : i32 to index
    %c0_10 = arith.constant 0 : index
    %43 = vector.load %arg4[%c0_9, %42, %c0_10] : memref<1x8x32xf32, #tpu.memory_space<vmem>>, vector<1x1x32xf32>
    %44 = vector.shape_cast %43 : vector<1x1x32xf32> to vector<1x32xf32>
    %45 = vector.shape_cast %41 : vector<1x32xf32> to vector<1x1x32xf32>
    tpu.vector_store %arg4[%c0_9, %42, %c0_10], %45 {strides = array<i32>} : memref<1x8x32xf32, #tpu.memory_space<vmem>>, vector<1x1x32xf32>,
    %c3_i32 = arith.constant 3 : i32
    %46 = arith.addi %0, %c3_i32 : i32
    %47 = arith.index_cast %46 : i32 to index
    %48 = memref.load %arg1[%47] : memref<16xi32, #tpu.memory_space<smem>>
    %49 = arith.addi %0, %c3_i32 : i32
    %50 = arith.index_cast %49 : i32 to index
    %51 = memref.load %arg2[%50] : memref<16xf32, #tpu.memory_space<smem>>
    %c0_11 = arith.constant 0 : index
    %52 = arith.index_cast %48 : i32 to index
    %c0_12 = arith.constant 0 : index
    %53 = vector.load %arg3[%c0_11, %52, %c0_12] : memref<1x16x32xf32, #tpu.memory_space<vmem>>, vector<1x1x32xf32>
    %54 = vector.shape_cast %53 : vector<1x1x32xf32> to vector<1x32xf32>
    %55 = vector.broadcast %51 : f32 to vector<1x32xf32>
    %56 = arith.mulf %54, %55 : vector<1x32xf32>
    %c0_13 = arith.constant 0 : index
    %57 = arith.index_cast %c3_i32 : i32 to index
    %c0_14 = arith.constant 0 : index
    %58 = vector.load %arg4[%c0_13, %57, %c0_14] : memref<1x8x32xf32, #tpu.memory_space<vmem>>, vector<1x1x32xf32>
    %59 = vector.shape_cast %58 : vector<1x1x32xf32> to vector<1x32xf32>
    %60 = vector.shape_cast %56 : vector<1x32xf32> to vector<1x1x32xf32>
    tpu.vector_store %arg4[%c0_13, %57, %c0_14], %60 {strides = array<i32>} : memref<1x8x32xf32, #tpu.memory_space<vmem>>, vector<1x1x32xf32>,
    %c4_i32 = arith.constant 4 : i32
    %61 = arith.addi %0, %c4_i32 : i32
    %62 = arith.index_cast %61 : i32 to index
    %63 = memref.load %arg1[%62] : memref<16xi32, #tpu.memory_space<smem>>
    %64 = arith.addi %0, %c4_i32 : i32
    %65 = arith.index_cast %64 : i32 to index
    %66 = memref.load %arg2[%65] : memref<16xf32, #tpu.memory_space<smem>>
    %c0_15 = arith.constant 0 : index
    %67 = arith.index_cast %63 : i32 to index
    %c0_16 = arith.constant 0 : index
    %68 = vector.load %arg3[%c0_15, %67, %c0_16] : memref<1x16x32xf32, #tpu.memory_space<vmem>>, vector<1x1x32xf32>
    %69 = vector.shape_cast %68 : vector<1x1x32xf32> to vector<1x32xf32>
    %70 = vector.broadcast %66 : f32 to vector<1x32xf32>
    %71 = arith.mulf %69, %70 : vector<1x32xf32>
    %c0_17 = arith.constant 0 : index
    %72 = arith.index_cast %c4_i32 : i32 to index
    %c0_18 = arith.constant 0 : index
    %73 = vector.load %arg4[%c0_17, %72, %c0_18] : memref<1x8x32xf32, #tpu.memory_space<vmem>>, vector<1x1x32xf32>
    %74 = vector.shape_cast %73 : vector<1x1x32xf32> to vector<1x32xf32>
    %75 = vector.shape_cast %71 : vector<1x32xf32> to vector<1x1x32xf32>
    tpu.vector_store %arg4[%c0_17, %72, %c0_18], %75 {strides = array<i32>} : memref<1x8x32xf32, #tpu.memory_space<vmem>>, vector<1x1x32xf32>,
    %c5_i32 = arith.constant 5 : i32
    %76 = arith.addi %0, %c5_i32 : i32
    %77 = arith.index_cast %76 : i32 to index
    %78 = memref.load %arg1[%77] : memref<16xi32, #tpu.memory_space<smem>>
    %79 = arith.addi %0, %c5_i32 : i32
    %80 = arith.index_cast %79 : i32 to index
    %81 = memref.load %arg2[%80] : memref<16xf32, #tpu.memory_space<smem>>
    %c0_19 = arith.constant 0 : index
    %82 = arith.index_cast %78 : i32 to index
    %c0_20 = arith.constant 0 : index
    %83 = vector.load %arg3[%c0_19, %82, %c0_20] : memref<1x16x32xf32, #tpu.memory_space<vmem>>, vector<1x1x32xf32>
    %84 = vector.shape_cast %83 : vector<1x1x32xf32> to vector<1x32xf32>
    %85 = vector.broadcast %81 : f32 to vector<1x32xf32>
    %86 = arith.mulf %84, %85 : vector<1x32xf32>
    %c0_21 = arith.constant 0 : index
    %87 = arith.index_cast %c5_i32 : i32 to index
    %c0_22 = arith.constant 0 : index
    %88 = vector.load %arg4[%c0_21, %87, %c0_22] : memref<1x8x32xf32, #tpu.memory_space<vmem>>, vector<1x1x32xf32>
    %89 = vector.shape_cast %88 : vector<1x1x32xf32> to vector<1x32xf32>
    %90 = vector.shape_cast %86 : vector<1x32xf32> to vector<1x1x32xf32>
    tpu.vector_store %arg4[%c0_21, %87, %c0_22], %90 {strides = array<i32>} : memref<1x8x32xf32, #tpu.memory_space<vmem>>, vector<1x1x32xf32>,
    %c6_i32 = arith.constant 6 : i32
    %91 = arith.addi %0, %c6_i32 : i32
    %92 = arith.index_cast %91 : i32 to index
    %93 = memref.load %arg1[%92] : memref<16xi32, #tpu.memory_space<smem>>
    %94 = arith.addi %0, %c6_i32 : i32
    %95 = arith.index_cast %94 : i32 to index
    %96 = memref.load %arg2[%95] : memref<16xf32, #tpu.memory_space<smem>>
    %c0_23 = arith.constant 0 : index
    %97 = arith.index_cast %93 : i32 to index
    %c0_24 = arith.constant 0 : index
    %98 = vector.load %arg3[%c0_23, %97, %c0_24] : memref<1x16x32xf32, #tpu.memory_space<vmem>>, vector<1x1x32xf32>
    %99 = vector.shape_cast %98 : vector<1x1x32xf32> to vector<1x32xf32>
    %100 = vector.broadcast %96 : f32 to vector<1x32xf32>
    %101 = arith.mulf %99, %100 : vector<1x32xf32>
    %c0_25 = arith.constant 0 : index
    %102 = arith.index_cast %c6_i32 : i32 to index
    %c0_26 = arith.constant 0 : index
    %103 = vector.load %arg4[%c0_25, %102, %c0_26] : memref<1x8x32xf32, #tpu.memory_space<vmem>>, vector<1x1x32xf32>
    %104 = vector.shape_cast %103 : vector<1x1x32xf32> to vector<1x32xf32>
    %105 = vector.shape_cast %101 : vector<1x32xf32> to vector<1x1x32xf32>
    tpu.vector_store %arg4[%c0_25, %102, %c0_26], %105 {strides = array<i32>} : memref<1x8x32xf32, #tpu.memory_space<vmem>>, vector<1x1x32xf32>,
    %c7_i32 = arith.constant 7 : i32
    %106 = arith.addi %0, %c7_i32 : i32
    %107 = arith.index_cast %106 : i32 to index
    %108 = memref.load %arg1[%107] : memref<16xi32, #tpu.memory_space<smem>>
    %109 = arith.addi %0, %c7_i32 : i32
    %110 = arith.index_cast %109 : i32 to index
    %111 = memref.load %arg2[%110] : memref<16xf32, #tpu.memory_space<smem>>
    %c0_27 = arith.constant 0 : index
    %112 = arith.index_cast %108 : i32 to index
    %c0_28 = arith.constant 0 : index
    %113 = vector.load %arg3[%c0_27, %112, %c0_28] : memref<1x16x32xf32, #tpu.memory_space<vmem>>, vector<1x1x32xf32>
    %114 = vector.shape_cast %113 : vector<1x1x32xf32> to vector<1x32xf32>
    %115 = vector.broadcast %111 : f32 to vector<1x32xf32>
    %116 = arith.mulf %114, %115 : vector<1x32xf32>
    %c0_29 = arith.constant 0 : index
    %117 = arith.index_cast %c7_i32 : i32 to index
    %c0_30 = arith.constant 0 : index
    %118 = vector.load %arg4[%c0_29, %117, %c0_30] : memref<1x8x32xf32, #tpu.memory_space<vmem>>, vector<1x1x32xf32>
    %119 = vector.shape_cast %118 : vector<1x1x32xf32> to vector<1x32xf32>
    %120 = vector.shape_cast %116 : vector<1x32xf32> to vector<1x1x32xf32>
    tpu.vector_store %arg4[%c0_29, %117, %c0_30], %120 {strides = array<i32>} : memref<1x8x32xf32, #tpu.memory_space<vmem>>, vector<1x1x32xf32>,
    %c8_i32_31 = arith.constant 8 : i32
    return
  }
  func.func @transform_0(%arg0: i32, %arg1: memref<16xi32, #tpu.memory_space<smem>>) -> i32 {
    %c0_i32 = arith.constant 0 : i32
    %c0_i32_0 = arith.constant 0 : i32
    return %c0_i32 : i32
  }
  func.func @transform_1(%arg0: i32, %arg1: memref<16xi32, #tpu.memory_space<smem>>) -> (i32, i32, i32) {
    %c0_i32 = arith.constant 0 : i32
    %c0_i32_0 = arith.constant 0 : i32
    %c0_i32_1 = arith.constant 0 : i32
    return %arg0, %c0_i32, %c0_i32_0 : i32, i32, i32
  }
  func.func @transform_2(%arg0: i32, %arg1: memref<16xi32, #tpu.memory_space<smem>>) -> (i32, i32, i32) {
    %c0_i32 = arith.constant 0 : i32
    %c0_i32_0 = arith.constant 0 : i32
    %c0_i32_1 = arith.constant 0 : i32
    return %arg0, %c0_i32, %c0_i32_0 : i32, i32, i32
  }
}

</mosaic_0001>

<bundles_post_ra>
// kernel: graph_pool_forward.2
= control target key start
LH: loop header
LB: loop body
LE: loop exit
PB: predicated region body
PF: predicated region fallthrough
CT: control target
= control target key end

     0   :  { %9 = vsyncpa [#allocation4], 0  ;;  %s171_s12 = smov [#allocation3]   ;;  %s215_s0 = inlined_call_operand.hbm [shape: f32[2,16,32], index: 0, kind: input, shape index: {}]   ;;  %s216_s1 = inlined_call_operand.vmem [shape: f32[1,32], index: 1, kind: input, shape index: {}]   ;;  %s217_s2 = inlined_call_operand.<no memory space> [shape: f32[1], index: 2, kind: input, shape index: {}]   ;;  %s218_s3 = inlined_call_operand.vmem [shape: f32[2,16], index: 3, kind: output, shape index: {}]  }
   0x1   :  { %s15_s13 = sshll.u32 %s171_s12, 4  ;;  %s147_s16 = scalar_lea.hbm %s215_s0, 512  ;;  %s16_s13 = int_to_ptr.vmem [resolvable:$true] %s15_s13 }
   0x2   :  { %p148_p0 = scmp.ne.s32.totalorder %s215_s0, %s147_s16  ;;  %p151_p1 = scmp.lt.u32.totalorder %s147_s16, %s215_s0 }
   0x4   :  { %p153_p2 = pnand %p151_p1, %p148_p0 }
   0x6   :  { %156 = shalt.err (!%p153_p2)
}
   0x7   :  { %s157_s21 = scalar_lea.vmem %s16_s13, 512  ;;  %p162_p4 = scmp.lt.s32.totalorder %s16_s13, %s16_s13 }
   0x8   :  { %p158_p3 = scmp.ne.s32.totalorder %s16_s13, %s157_s21  ;;  %p163_p5 = scmp.lt.s32.totalorder %s157_s21, %s157_s21 }
   0xa   :  { %p164_p6 = por %p163_p5, %p162_p4 }
   0xc   :  { %p165_p7 = pnand %p164_p6, %p158_p3 }
   0xe   :  { %168 = shalt.err (!%p165_p7)
}
   0xf   :  { %s172_s22 = smov 128   ;;  %s173_s23 = smov 8  }
  0x10   :  { %21 = dma.hbm_to_vmem [thread:$0]  %s215_s0, 512, %s16_s13, [#allocation4], %s172_s22, %s172_s22, %s173_s23  }
  0x11   :  { %169 = dma.done.wait [#allocation4], 512  }
  0x12   :  { %170 = vsyncadd [#allocation4], 4294966784  ;;  %v31_v0 = vld [vmem:[#allocation3 + $0x10] sm:$0xff]  ;;  %v123_v1 = vld [vmem:[%s216_s1] ss:$0 sm:$0xff]  ;;  %vm44_vm0 = vcmask 261120   ;;  %v58_v13 = vstv %s217_s2  ;;  %v91_v31 = vlaneseq }
  0x13   :  { %v29_v2 = vld [vmem:[#allocation3] sm:$0xff]  ;;  %v42_v3 = vmul.f32 %v123_v1, %v31_v0  ;;  %v32_v5 = vld [vmem:[#allocation3 + $0x18] sm:$0xff]  ;;  %v30_v6 = vld [vmem:[#allocation3 + $0x8] sm:$0xff]  ;;  %vm102_vm1 = vcmask 130112   ;;  %vm113_vm2 = vcmask 1041409   ;;  %vm116_vm3 = vcmask 123904  }
  0x14   :  { %v40_v4 = vmul.f32 %v123_v1, %v29_v2  ;;  %v43_v7 = vmul.f32 %v123_v1, %v32_v5  ;;  %v41_v8 = vmul.f32 %v123_v1, %v30_v6  ;;  %v92_v35 = vand.u32 127, %v91_v31 }
  0x15   :  { %v51_v9 = vsel %vm44_vm0, %v42_v3, 0.0  ;;  %v94_v36 = vshrl.u32 %v91_v31, 7 }
  0x16   :  { %v45_v10 = vsel %vm44_vm0, %v40_v4, 0.0  ;;  %52 = vadd.xlane.f32.xlu1 %v51_v9  ;;  %v54_v11 = vsel %vm44_vm0, %v43_v7, 0.0  ;;  %v48_v12 = vsel %vm44_vm0, %v41_v8, 0.0  ;;  %v97_v37 = vadd.s32 4294967288, %v92_v35 }
  0x17   :  { %46 = vadd.xlane.f32.xlu0 %v45_v10  ;;  %v95_v38 = vsub.s32 %v92_v35, %v94_v36 }
  0x18   :  { %v100_v39 = vsub.s32 %v97_v37, %v94_v36 }
  0x1a   :  { %55 = vadd.xlane.f32.xlu1 %v54_v11 }
  0x1b   :  { %49 = vadd.xlane.f32.xlu0 %v48_v12 }
  0xa3   :  { %v53_v14 = vpop.xlane.xlu1 %52 }
  0xa4   :  { %v47_v15 = vpop.xlane.xlu0 %46  ;;  %v61_v16 = vadd.f32 %v58_v13, %v53_v14 }
  0xa5   :  { %v59_v17 = vadd.f32 %v58_v13, %v47_v15 }
  0xa6   :  { %v126_v18 = vmul.f32 -1.442695, %v61_v16 }
  0xa7   :  { %v124_v19 = vmul.f32 -1.442695, %v59_v17  ;;  %v56_v20 = vpop.xlane.xlu1 %55 }
  0xa8   :  { %v50_v21 = vpop.xlane.xlu0 %49  ;;  %131 = vpow2.f32 %v126_v18  ;;  %v62_v22 = vadd.f32 %v58_v13, %v56_v20 }
  0xa9   :  { %v60_v23 = vadd.f32 %v58_v13, %v50_v21  ;;  %133 = vpow2.f32 %v124_v19 }
  0xaa   :  { %v127_v24 = vmul.f32 -1.442695, %v62_v22 }
  0xab   :  { %v125_v25 = vmul.f32 -1.442695, %v60_v23 }
  0xac   :  { %135 = vpow2.f32 %v127_v24 }
  0xad   :  { %137 = vpow2.f32 %v125_v25 }
  0xb2   :  { %v132_v26 = vpop.eup %131 }
  0xb3   :  { %v134_v27 = vpop.eup %133  ;;  %v77_v28 = vadd.f32 1.0, %v132_v26 }
  0xb4   :  { %v75_v29 = vadd.f32 1.0, %v134_v27 }
  0xb5   :  { %139 = vrcp.f32 %v77_v28 }
  0xb6   :  { %v136_v30 = vpop.eup %135  ;;  %141 = vrcp.f32 %v75_v29 }
  0xb7   :  { %v138_v32 = vpop.eup %137  ;;  %v78_v33 = vadd.f32 1.0, %v136_v30 }
  0xb8   :  { %v76_v34 = vadd.f32 1.0, %v138_v32 }
  0xb9   :  { %143 = vrcp.f32 %v78_v33 }
  0xba   :  { %145 = vrcp.f32 %v76_v34 }
  0xbf   :  { %v140_v40 = vpop.eup %139 }
  0xc0   :  { %v142_v41 = vpop.eup %141  ;;  %v107_v44 = vrot.slane %v140_v40, %v95_v38 }
  0xc1   :  { %v96_v46 = vrot.slane %v142_v41, %v95_v38 }
  0xc3   :  { %v144_v42 = vpop.eup %143 }
  0xc4   :  { %v146_v43 = vpop.eup %145  ;;  %v111_v45 = vrot.slane %v144_v42, %v100_v39 }
  0xc5   :  { %v101_v47 = vrot.slane %v146_v43, %v100_v39 }
  0xc6   :  { %v112_v48 = vsel %vm102_vm1, %v111_v45, %v107_v44 }
  0xc7   :  { %v103_v49 = vsel %vm102_vm1, %v101_v47, %v96_v46 }
  0xc8   :  { %v114_v50 = vsel %vm113_vm2, %v112_v48, %v103_v49 }
  0xc9   :  { %117 = vst.msk [vmem:[%s218_s3] sm:$0x3] %vm116_vm3, %v114_v50 }
  0xca   :  { %122 = vsyncpa [#allocation4], 1 }

// kernel: graph_pool_forward.3
= control target key start
LH: loop header
LB: loop body
LE: loop exit
PB: predicated region body
PF: predicated region fallthrough
CT: control target
= control target key end

     0   :  { %s673_s0 = inlined_call_operand.vmem [shape: s32[16], index: 0, kind: input, shape index: {}]   ;;  %s674_s1 = inlined_call_operand.vmem [shape: f32[16], index: 1, kind: input, shape index: {}]   ;;  %s675_s2 = inlined_call_operand.vmem [shape: f32[2,16,32], index: 2, kind: input, shape index: {}]   ;;  %s676_s3 = inlined_call_operand.hbm [shape: f32[2,8,32], index: 3, kind: output, shape index: {}]  }
   0x1   :  { %s8_s14 = sshll.u32 %s673_s0, 4  ;;  %s9_s14 = int_to_ptr.vmem [resolvable:$true] %s8_s14 }
   0x2   :  { %s387_s15 = scalar_lea.vmem %s9_s14, 16  ;;  %p392_p1 = scmp.lt.s32.totalorder %s9_s14, %s9_s14 }
   0x3   :  { %p388_p0 = scmp.ne.s32.totalorder %s9_s14, %s387_s15  ;;  %p393_p2 = scmp.lt.s32.totalorder %s387_s15, %s387_s15 }
   0x5   :  { %p394_p3 = por %p393_p2, %p392_p1 }
   0x7   :  { %p395_p4 = pnand %p394_p3, %p388_p0 }
   0x9   :  { %398 = shalt.err (!%p395_p4)  }
   0xa   :  { %s484_s16 = smov [#allocation3]  }
   0xb   :  { %11 = dma.vmem_to_smem %s9_s14, 16, %s484_s16, [#allocation2] }
   0xc   :  { %458 = dma.done.wait [#allocation2], 16 }
   0xd   :  { %459 = vsyncadd [#allocation2], 4294967280 }
   0xe   :  { %13 = sfence }
   0xf   :  { %14 = vsyncpa [#allocation6], 0 }
  0x10   :  { %15 = vsyncpa [#allocation5], 0 }
  0x11   :  { %17 = vsyncpa [#allocation5 + $0x1], 0  ;;  %s510_s17 = smov 0   ;;  %s512_s18 = smov 0  }
  0x12   :  { %s514_s0 = smov 0   ;;  %s516_s19 = smov 0  }
  0x13 LB: > { %s531_s20 = sadd.s32 4294967295, %s482_s19   ;;  %s321_s21 = sadd.s32 4294967294, %s482_s19   ;;  %s482_s19 = sphi %s516_s19, %s685_s19   ;;  %s478_s0 = sphi %s514_s0, %s684_s0   ;;  %s474_s18 = sphi %s512_s18, %s683_s18   ;;  %s470_s17 = sphi %s510_s17, %s682_s17  }
  0x14   : > { %s535_s22 = sadd.s32 1, %s482_s19   ;;  %s77_s23 = sadd.s32 1, %s478_s0 }
  0x15   : > { %s74_s24 = ssub.s32 %s482_s19, %s535_s22  ;;  %p87_p5 = scmp.ne.s32.totalorder %s478_s0, %s474_s18 }
  0x16   : > { %p75_p6 = scmp.eq.s32.totalorder %s74_s24, 0  ;;  %p88_p7 = scmp.eq.s32.totalorder %s531_s20, 1 }
  0x17   : > { %p93_p8 = scmp.ne.s32.totalorder %s474_s18, %s470_s17  ;;  %p94_p9 = scmp.eq.s32.totalorder %s321_s21, 1 }
  0x18   : > { %s546_s25 = scalar_select %p75_p6, %s478_s0, %s77_s23  }
  0x19   : > { %p548_p10 = por %p88_p7, %p87_p5  ;;  %p552_p11 = por %p94_p9, %p93_p8 }
  0x1a   : > { %p322_p12 = scmp.ge.s32.totalorder %s482_s19, 1  ;;  %p101_p13 = scmp.lt.s32.totalorder %s482_s19, 3 }
  0x1b   : > { %p350_p0 = scmp.eq.s32.totalorder %s531_s20, 0  ;;  %s114_s4 = sshll.u32 %s674_s1, 4  ;;  %s115_s4 = int_to_ptr.vmem [resolvable:$true] %s114_s4 }
  0x1c   : > { %p559_p1 = pnand %p322_p12, %p101_p13  ;;  %s399_s5 = scalar_lea.vmem %s115_s4, 16 }
  0x1d   : > { %p400_p4 = scmp.ne.s32.totalorder %s115_s4, %s399_s5  ;;  %p407_p8 = scmp.lt.s32.totalorder %s115_s4, %s115_s4 }
  0x1e   : > { %p342_p2 = pneg %p559_p1  ;;  %p408_p9 = scmp.lt.s32.totalorder %s399_s5, %s399_s5 }
  0x20   : > { %p343_p3 = pnand %p350_p0, %p342_p2  ;;  %p409_p12 = por %p408_p9, %p407_p8 }
  0x22   : > { %p401_p5 = pneg %p343_p3 }
  0x24   : > { %p402_p6 = pnand %p401_p5, %p400_p4 }
  0x26   : > { %p403_p7 = pneg %p402_p6 }
  0x28   : > { %p410_p13 = pnand %p409_p12, %p403_p7 }
  0x2a   : > { %413 = shalt.err (!%p410_p13)
}
  0x2b   : > { %s485_s6 = smov [#allocation4]   ;;  %135 = sbr.rel (%p559_p1) target bundleno = 98 (0x62), region = 28 }
  0x2c   : > { %345 = dma.vmem_to_smem (!%p343_p3), %s115_s4, 16, %s485_s6, [#allocation6]  }
  0x32   : > { %461 = dma.done.wait (%p350_p0), [#allocation6], 16  }
  0x33   : > { %463 = vsyncadd (%p350_p0), [#allocation6], 4294967280 }
  0x34   : > { %141 = sfence }
  0x35   : > { %s677_s7 = sand.u32 1, %s474_s18   ;;  %p158_p2 = scmp.lt.s32.totalorder %s531_s20, 1  ;;  %vm170_vm0 = vcmask 253952  }
  0x36   : > { %s327_s8 = sshll.u32 %s677_s7, 3  ;;  %s581_s9 = sshll.u32 %s531_s20, 3 }
  0x37   : > { %s164_s10 = sld [smem:[#allocation3 + %s581_s9]]  ;;  %s172_s14 = sadd.s32 1, %s581_s9 }
  0x38   : > { %s159_s11 = scalar_select %p158_p2, %s531_s20, 1 }
  0x39   : > { %s165_s12 = sld [smem:[#allocation4 + %s581_s9]]  ;;  %s180_s28 = sadd.s32 2, %s581_s9 }
  0x3a   : > { %s335_s13 = sshll.u32 %s159_s11, 4  ;;  %s173_s23 = sld [smem:[#allocation3 + %s172_s14]] }
  0x3b   : > { %s590_s21 = scalar_lea.vmem %s675_s2, %s335_s13  ;;  %s174_s24 = sld [smem:[#allocation4 + %s172_s14]] }
  0x3c   : > { %s181_s30 = sld [smem:[#allocation3 + %s180_s28]]  ;;  %s188_s5 = sadd.s32 3, %s581_s9 }
  0x3d   : > { %s166_s29 = scalar_lea.vmem %s590_s21, %s164_s10  ;;  %s182_s4 = sld [smem:[#allocation4 + %s180_s28]] }
  0x3e   : > { %v167_v0 = vld [vmem:[%s166_s29] sm:$0x1]  ;;  %s189_s6 = sld [smem:[#allocation3 + %s188_s5]]  ;;  %s196_s15 = sadd.s32 4, %s581_s9 }
  0x3f   : > { %v168_v1 = vstv %s165_s12  ;;  %s190_s11 = sld [smem:[#allocation4 + %s188_s5]]  ;;  %s204_s13 = sadd.s32 5, %s581_s9 }
  0x40   : > { %v169_v2 = vmul.f32 %v168_v1, %v167_v0  ;;  %s175_s16 = scalar_lea.vmem %s590_s21, %s173_s23  ;;  %s197_s7 = sld [smem:[#allocation3 + %s196_s15]] }
  0x41   : > { %s598_s14 = scalar_lea.vmem [#allocation7], %s327_s8  ;;  %v176_v3 = vld [vmem:[%s175_s16] sm:$0x1]  ;;  %v177_v4 = vstv %s174_s24  ;;  %s198_s10 = sld [smem:[#allocation4 + %s196_s15]] }
  0x42   : > { %171 = vst.msk [vmem:[%s598_s14] sm:$0x1] %vm170_vm0, %v169_v2  ;;  %s205_s12 = sld [smem:[#allocation3 + %s204_s13]]  ;;  %v178_v5 = vmul.f32 %v177_v4, %v176_v3  ;;  %s183_s28 = scalar_lea.vmem %s590_s21, %s181_s30 }
  0x43   : > { %s206_s29 = sld [smem:[#allocation4 + %s204_s13]]  ;;  %v184_v6 = vld [vmem:[%s183_s28] sm:$0x1]  ;;  %v185_v7 = vstv %s182_s4  ;;  %s212_s23 = sadd.s32 6, %s581_s9 }
  0x44   : > { %s220_s5 = sadd.s32 7, %s581_s9  ;;  %179 = vst.msk [vmem:[%s598_s14 + $0x1] sm:$0x1] %vm170_vm0, %v178_v5  ;;  %v186_v8 = vmul.f32 %v185_v7, %v184_v6  ;;  %s191_s8 = scalar_lea.vmem %s590_s21, %s189_s6 }
  0x45   : > { %v193_v9 = vstv %s190_s11  ;;  %s213_s16 = sld [smem:[#allocation3 + %s212_s23]]  ;;  %v192_v10 = vld [vmem:[%s191_s8] sm:$0x1]  ;;  %s332_s6 = sshll.u32 %s531_s20, 7 }
  0x46   : > { %s214_s24 = sld [smem:[#allocation4 + %s212_s23]]  ;;  %187 = vst.msk [vmem:[%s598_s14 + $0x2] sm:$0x1] %vm170_vm0, %v186_v8  ;;  %v194_v11 = vmul.f32 %v193_v9, %v192_v10  ;;  %s199_s4 = scalar_lea.vmem %s590_s21, %s197_s7 }
  0x47   : > { %s221_s30 = sld [smem:[#allocation3 + %s220_s5]]  ;;  %v200_v12 = vld [vmem:[%s199_s4] sm:$0x1]  ;;  %v201_v13 = vstv %s198_s10  ;;  %s242_s13 = sshll.u32 %s598_s14, 4  ;;  %s627_s13 = int_to_ptr.vmem [resolvable:$true] %s242_s13 }
  0x48   : > { %s222_s9 = sld [smem:[#allocation4 + %s220_s5]]  ;;  %s207_s15 = scalar_lea.vmem %s590_s21, %s205_s12  ;;  %195 = vst.msk [vmem:[%s598_s14 + $0x3] sm:$0x1] %vm170_vm0, %v194_v11  ;;  %v202_v14 = vmul.f32 %v201_v13, %v200_v12 }
  0x49   : > { %v208_v15 = vld [vmem:[%s207_s15] sm:$0x1]  ;;  %v209_v16 = vstv %s206_s29  ;;  %s625_s28 = scalar_lea.hbm %s676_s3, %s332_s6  ;;  %s681_s20 = sand.u32 1, %s474_s18  }
  0x4a   : > { %v210_v17 = vmul.f32 %v209_v16, %v208_v15  ;;  %203 = vst.msk [vmem:[%s598_s14 + $0x4] sm:$0x1] %vm170_vm0, %v202_v14  ;;  %s414_s29 = scalar_lea.vmem %s627_s13, 128  ;;  %s486_s23 = smov [#allocation7]  }
  0x4b   : > { %s215_s11 = scalar_lea.vmem %s590_s21, %s213_s16  ;;  %p415_p0 = scmp.ne.s32.totalorder %s627_s13, %s414_s29 }
  0x4c   : > { %211 = vst.msk [vmem:[%s598_s14 + $0x5] sm:$0x1] %vm170_vm0, %v210_v17  ;;  %v216_v18 = vld [vmem:[%s215_s11] sm:$0x1]  ;;  %v217_v19 = vstv %s214_s24  ;;  %s418_s5 = sshll.u32 %s486_s23, 4  ;;  %s419_s5 = int_to_ptr.vmem [resolvable:$false] %s418_s5 }
  0x4d   : > { %s223_s7 = scalar_lea.vmem %s590_s21, %s221_s30  ;;  %v218_v20 = vmul.f32 %v217_v19, %v216_v18  ;;  %s229_s21 = scalar_lea.sflag [#allocation5], %s681_s20 }
  0x4e   : > { %v224_v21 = vld [vmem:[%s223_s7] sm:$0x1]  ;;  %v225_v22 = vstv %s222_s9  ;;  %p416_p1 = pnand %p415_p0, %p548_p10  ;;  %s420_s8 = scalar_lea.vmem %s419_s5, 256 }
  0x4f   : > { %v226_v23 = vmul.f32 %v225_v22, %v224_v21  ;;  %219 = vst.msk [vmem:[%s598_s14 + $0x6] sm:$0x1] %vm170_vm0, %v218_v20  ;;  %p421_p4 = scmp.lt.s32.totalorder %s627_s13, %s419_s5  ;;  %p422_p5 = scmp.lt.s32.totalorder %s420_s8, %s414_s29 }
  0x50   : > { %p417_p3 = pneg %p416_p1 }
  0x51   : > { %227 = vst.msk [vmem:[%s598_s14 + $0x7] sm:$0x1] %vm170_vm0, %v226_v23  ;;  %p423_p6 = por %p422_p5, %p421_p4 }
  0x53   : > { %p424_p7 = pnand %p423_p6, %p417_p3 }
  0x55   : > { %427 = shalt.err (!%p424_p7)
}
  0x56   : > { %s428_s14 = scalar_lea.hbm %s625_s28, 128  ;;  %s432_s30 = scalar_lea.hbm %s676_s3, 256 }
  0x57   : > { %p429_p8 = scmp.ne.s32.totalorder %s625_s28, %s428_s14  ;;  %p433_p13 = scmp.lt.u32.totalorder %s625_s28, %s676_s3 }
  0x58   : > { %p434_p2 = scmp.lt.u32.totalorder %s432_s30, %s428_s14  ;;  %p436_p1 = scmp.lt.u32.totalorder %s428_s14, %s625_s28 }
  0x59   : > { %p430_p9 = pnand %p429_p8, %p548_p10 }
  0x5a   : > { %p435_p0 = por %p434_p2, %p433_p13 }
  0x5b   : > { %p431_p12 = pneg %p430_p9 }
  0x5c   : > { %p437_p3 = por %p436_p1, %p435_p0 }
  0x5e   : > { %p438_p4 = pnand %p437_p3, %p431_p12 }
  0x60   : > { %441 = shalt.err (!%p438_p4)
}
  0x61   : > { %340 = dma.vmem_to_hbm [thread:$0]  (%p548_p10), %s627_s13, 128, %s625_s28, %s229_s21  }
  0x62 PF: > { %p352_p5 = scmp.ge.s32.totalorder %s482_s19, 2  ;;  %s254_s15 = sand.u32 1, %s470_s17  }
  0x63   : > { %s255_s6 = scalar_lea.sflag [#allocation5], %s254_s15 }
  0x64   : > { %p347_p6 = pnand %p352_p5, %p552_p11 }
  0x66   : > { %465 = dma.done.wait (!%p347_p6), %s255_s6, 128  }
  0x67   : > { %467 = vsyncadd (!%p347_p6), %s255_s6, 4294967168  ;;  %p20_p7 = scmp.ge.s32.totalorder %s535_s22, 4   ;;  %s682_s17 = smov %s474_s18 }
  0x68   : > { %s683_s18 = smov %s478_s0  ;;  %s684_s0 = smov %s546_s25 }
  0x69   : > { %s685_s19 = smov %s535_s22  ;;  %22 = sbr.rel (!%p20_p7) target bundleno = 19 (0x13), region = 76 }
  0x70   :  { %260 = vsyncpa [#allocation5], 1 }
  0x71   :  { %262 = vsyncpa [#allocation5 + $0x1], 1 }
  0x72   :  { %263 = vsyncpa [#allocation6], 1 }
  0x73   :  { %265 = vsyncpa [#allocation6 + $0x1], 1 }

</bundles_post_ra>
